<compile_context>
chip_gen: v6e
topology: v6e:2x2x1
jax: 0.10.0
libtpu: 0.0.40
codegen_flags: <defaults>
</compile_context>

<pallas_src>
import jax
import jax.numpy as jnp
from jax.experimental import pallas as pl
from jax.experimental.pallas import tpu as pltpu

SQRT2 = 1.4142135623730951


def _round_up(x, m):
    return (x + m - 1) // m * m


def _gelu_exact(h):
    # exact (erf) GELU, matching torch.nn.GELU(approximate='none')
    return 0.5 * h * (1.0 + jax.lax.erf(h * (1.0 / SQRT2)))


def _mlp_kernel_fused(x_ref, w1_ref, b1_ref, w2_ref, o_ref):
    """Single H chunk: grid = (M tiles,) [parallel]. No scratch accumulator."""
    h = jnp.dot(x_ref[...], w1_ref[...], preferred_element_type=jnp.float32)
    h = h + b1_ref[...]                       # fc1 bias in f32
    h = _gelu_exact(h)                        # GELU; dropout(p=0) == identity
    o_ref[...] = jnp.dot(h.astype(w2_ref.dtype), w2_ref[...],
                         preferred_element_type=jnp.float32).astype(o_ref.dtype)
    # dropout(p=0.0) -> identity


def _mlp_kernel_acc(x_ref, w1_ref, b1_ref, w2_ref, o_ref, acc_ref):
    """H tiled: grid = (M tiles [parallel], H tiles [arbitrary / reduction])."""
    k = pl.program_id(1)

    @pl.when(k == 0)
    def _init():
        acc_ref[...] = jnp.zeros_like(acc_ref)

    # fc1 chunk: (tm, C_in)bf16 @ (C_in, th)bf16 -> f32
    h = jnp.dot(x_ref[...], w1_ref[...], preferred_element_type=jnp.float32)
    h = h + b1_ref[...]
    h = _gelu_exact(h)
    # fc2 partial product (no bias): accumulate in f32
    acc_ref[...] += jnp.dot(h.astype(w2_ref.dtype), w2_ref[...],
                            preferred_element_type=jnp.float32)

    @pl.when(k == pl.num_programs(1) - 1)
    def _store():
        o_ref[...] = acc_ref[...].astype(o_ref.dtype)


def mlp_layer_pallas(x, w1, b1, w2, shape=None, *, tm=256, th_max=512):
    """x: (B, N, C_in).  w1: (C_in, H), b1: (H,), w2: (H, C_out).

    `shape` is accepted for signature fidelity with the PyTorch module but unused.
    """
    del shape
    B, N, C_in = x.shape
    assert w1.shape[0] == C_in
    H = w1.shape[1]
    C_out = w2.shape[1]
    M = B * N
    out_dtype = x.dtype
    out_itemsize = jnp.dtype(out_dtype).itemsize

    # ---- tile choices -------------------------------------------------------
    # Row tile: big (up to 256) but never larger than the (8-aligned) token count.
    tm = max(8, min(tm, _round_up(M, 8)))
    tm = _round_up(tm, 8)
    M_pad = _round_up(M, tm)

    # Hidden tile: keep whole H if small, otherwise chunk it (multiple of 128).
    if H <= th_max:
        th, H_pad = H, H
    else:
        th = th_max
        H_pad = _round_up(H, th)

    # Lane-dense output slab (unmasked vst on the output path).
    C_out_pad = _round_up(C_out, 128)

    # ---- operand prep (pad + bf16 cast for MXU inputs; bias stays f32) ------
    x2d = x.reshape(M, C_in)
    if M_pad != M:
        x2d = jnp.pad(x2d, ((0, M_pad - M), (0, 0)))
    x2d = x2d.astype(jnp.bfloat16)

    w1p, b1p, w2p = w1, b1, w2
    if H_pad != H:
        w1p = jnp.pad(w1p, ((0, 0), (0, H_pad - H)))
        b1p = jnp.pad(b1p, (0, H_pad - H))
        w2p = jnp.pad(w2p, ((0, H_pad - H), (0, 0)))
    if C_out_pad != C_out:
        w2p = jnp.pad(w2p, ((0, 0), (0, C_out_pad - C_out)))
    w1p = w1p.astype(jnp.bfloat16)
    w2p = w2p.astype(jnp.bfloat16)
    b1p = b1p.reshape(1, H_pad).astype(jnp.float32)

    n_m = M_pad // tm
    n_h = H_pad // th

    # ---- scheduler / VMEM hints --------------------------------------------
    flops = 2 * M_pad * (C_in * H_pad + H_pad * C_out_pad)
    bytes_accessed = (M_pad * C_in * 2 + C_in * H_pad * 2 + H_pad * 4
                      + H_pad * C_out_pad * 2 + M_pad * C_out_pad * out_itemsize)
    # per-step footprint: double-buffered I/O tiles + f32 accumulator + f32 intermediate
    vmem_est = (2 * (tm * C_in * 2 + C_in * th * 2 + th * 4
                     + th * C_out_pad * 2 + tm * C_out_pad * out_itemsize)
                + tm * C_out_pad * 4 + tm * th * 4)
    vmem_limit = int(min(64 * 1024 * 1024, max(32 * 1024 * 1024, 2 * vmem_est)))

    cost = pl.CostEstimate(flops=flops,
                           transcendentals=M_pad * H_pad,
                           bytes_accessed=bytes_accessed)

    if n_h == 1:
        # Whole hidden dim resident: fused single-pass kernel, 1-D grid.
        grid_spec = pltpu.PrefetchScalarGridSpec(
            num_scalar_prefetch=0,
            grid=(n_m,),
            in_specs=[
                pl.BlockSpec((tm, C_in), lambda i: (i, 0)),          # x tile
                pl.BlockSpec((C_in, H_pad), lambda i: (0, 0)),       # fc1 weight
                pl.BlockSpec((1, H_pad), lambda i: (0, 0)),          # fc1 bias
                pl.BlockSpec((H_pad, C_out_pad), lambda i: (0, 0)),  # fc2 weight
            ],
            out_specs=pl.BlockSpec((tm, C_out_pad), lambda i: (i, 0)),
        )
        kernel = _mlp_kernel_fused
        dim_sem = ("parallel",)
    else:
        grid_spec = pltpu.PrefetchScalarGridSpec(
            num_scalar_prefetch=0,
            grid=(n_m, n_h),
            in_specs=[
                pl.BlockSpec((tm, C_in), lambda i, k: (i, 0)),        # x tile
                pl.BlockSpec((C_in, th), lambda i, k: (0, k)),        # fc1 weight chunk
                pl.BlockSpec((1, th), lambda i, k: (0, k)),           # fc1 bias chunk
                pl.BlockSpec((th, C_out_pad), lambda i, k: (k, 0)),   # fc2 weight chunk
            ],
            out_specs=pl.BlockSpec((tm, C_out_pad), lambda i, k: (i, 0)),
            scratch_shapes=[pltpu.VMEM((tm, C_out_pad), jnp.float32)],
        )
        kernel = _mlp_kernel_acc
        dim_sem = ("parallel", "arbitrary")

    out2d = pl.pallas_call(
        kernel,
        out_shape=jax.ShapeDtypeStruct((M_pad, C_out_pad), out_dtype),
        grid_spec=grid_spec,
        compiler_params=pltpu.CompilerParams(
            dimension_semantics=dim_sem,
            vmem_limit_bytes=vmem_limit,
        ),
        cost_estimate=cost,
    )(x2d, w1p, b1p, w2p)

    return out2d[:M, :C_out].reshape(B, N, C_out)


def mlp_layer_ref(x, w1, b1, w2):
    h = jnp.einsum("bnc,ch->bnh", x, w1) + b1
    h = 0.5 * h * (1.0 + jax.lax.erf(h / SQRT2))
    return jnp.einsum("bnh,ho->bno", h, w2)


if __name__ == "__main__":
    # Module config: in_features=32, hidden_features=64, out_features=32,
    # act_layer='GELU', mlp_fc2_bias=False, drop=0.0
    # NOTE: this toy size is overhead-dominated; benchmark at production
    # InternImage shapes (C >= 128, M in the tens of thousands) for tuning.
    B, N = 2, 64            # batch of 2, 8x8 spatial tokens
    C_in, Hid, C_out = 32, 64, 32

    key = jax.random.PRNGKey(0)
    kx, k1, kb, k2 = jax.random.split(key, 4)

    x = jax.random.normal(kx, (B, N, C_in), dtype=jnp.float32)
    # deterministic synthetic parameters (fc1 has bias, fc2 has no bias)
    w1 = jax.random.normal(k1, (C_in, Hid), dtype=jnp.float32) * 0.05
    b1 = jax.random.normal(kb, (Hid,), dtype=jnp.float32) * 0.05
    w2 = jax.random.normal(k2, (Hid, C_out), dtype=jnp.float32) * 0.05

    out = mlp_layer_pallas(x, w1, b1, w2, shape=(8, 8))
    out = jax.block_until_ready(out)

    ref = mlp_layer_ref(x, w1, b1, w2)
    assert out.shape == (B, N, C_out)
    # bf16 matmul inputs (f32 accumulation) -> loosened tolerance vs f32 reference
    assert jnp.allclose(out, ref, atol=2e-2, rtol=2e-2), "mismatch vs reference"

    print("KERNEL_OK")
</pallas_src>

<mosaic_0001>
module attributes {stable_mosaic.version = 11 : i64} {
  func.func @_mlp_kernel_fused(%arg0: i32, %arg1: memref<128x32xbf16, #tpu.memory_space<vmem>>, %arg2: memref<32x64xbf16, #tpu.memory_space<vmem>>, %arg3: memref<1x64xf32, #tpu.memory_space<vmem>>, %arg4: memref<64x128xbf16, #tpu.memory_space<vmem>>, %arg5: memref<128x128xf32, #tpu.memory_space<vmem>>) attributes {dimension_semantics = [#tpu.dimension_semantics<parallel>], iteration_bounds = array<i64: 1>, scalar_prefetch = 0 : i64, scratch_operands = 0 : i64, tpu.core_type = #tpu.core_type<tc>, window_params = [{transform_indices = @transform_0, window_bounds = array<i64: 128, 32>}, {pipeline_mode = #tpu.pipeline_mode<synchronous>, transform_indices = @transform_1, window_bounds = array<i64: 32, 64>}, {pipeline_mode = #tpu.pipeline_mode<synchronous>, transform_indices = @transform_2, window_bounds = array<i64: 1, 64>}, {pipeline_mode = #tpu.pipeline_mode<synchronous>, transform_indices = @transform_3, window_bounds = array<i64: 64, 128>}, {transform_indices = @transform_4, window_bounds = array<i64: 128, 128>}]} {
    %c0 = arith.constant 0 : index
    %c0_0 = arith.constant 0 : index
    %0 = vector.load %arg1[%c0, %c0_0] : memref<128x32xbf16, #tpu.memory_space<vmem>>, vector<128x32xbf16>
    %c0_1 = arith.constant 0 : index
    %c0_2 = arith.constant 0 : index
    %1 = vector.load %arg2[%c0_1, %c0_2] : memref<32x64xbf16, #tpu.memory_space<vmem>>, vector<32x64xbf16>
    %cst = arith.constant dense<0.000000e+00> : vector<128x64xf32>
    %2 = tpu.matmul %0, %1, %cst {dimension_numbers = #tpu.dot_dimension_numbers<[1], [0], [0], [1], [0, 0, 1, 1], [], []>} : vector<128x32xbf16>, vector<32x64xbf16>, vector<128x64xf32> -> vector<128x64xf32>
    %c0_3 = arith.constant 0 : index
    %c0_4 = arith.constant 0 : index
    %3 = vector.load %arg3[%c0_3, %c0_4] : memref<1x64xf32, #tpu.memory_space<vmem>>, vector<1x64xf32>
    %4 = vector.broadcast %3 : vector<1x64xf32> to vector<128x64xf32>
    %5 = arith.addf %2, %4 : vector<128x64xf32>
    %cst_5 = arith.constant 5.000000e-01 : f32
    %6 = vector.broadcast %cst_5 : f32 to vector<128x64xf32>
    %7 = arith.mulf %6, %5 : vector<128x64xf32>
    %cst_6 = arith.constant 0.707106769 : f32
    %8 = vector.broadcast %cst_6 : f32 to vector<128x64xf32>
    %9 = arith.mulf %5, %8 : vector<128x64xf32>
    %10 = math.erf %9 : vector<128x64xf32>
    %cst_7 = arith.constant 1.000000e+00 : f32
    %11 = vector.broadcast %cst_7 : f32 to vector<128x64xf32>
    %12 = arith.addf %11, %10 : vector<128x64xf32>
    %13 = arith.mulf %7, %12 : vector<128x64xf32>
    %14 = arith.truncf %13 : vector<128x64xf32> to vector<128x64xbf16>
    %c0_8 = arith.constant 0 : index
    %c0_9 = arith.constant 0 : index
    %15 = vector.load %arg4[%c0_8, %c0_9] : memref<64x128xbf16, #tpu.memory_space<vmem>>, vector<64x128xbf16>
    %cst_10 = arith.constant dense<0.000000e+00> : vector<128x128xf32>
    %16 = tpu.matmul %14, %15, %cst_10 {dimension_numbers = #tpu.dot_dimension_numbers<[1], [0], [0], [1], [0, 0, 1, 1], [], []>} : vector<128x64xbf16>, vector<64x128xbf16>, vector<128x128xf32> -> vector<128x128xf32>
    %c0_11 = arith.constant 0 : index
    %c0_12 = arith.constant 0 : index
    %17 = vector.load %arg5[%c0_11, %c0_12] : memref<128x128xf32, #tpu.memory_space<vmem>>, vector<128x128xf32>
    tpu.vector_store %arg5[%c0_11, %c0_12], %16 {strides = array<i32>} : memref<128x128xf32, #tpu.memory_space<vmem>>, vector<128x128xf32>,
    return
  }
  func.func @transform_0(%arg0: i32) -> (i32, i32) {
    %c0_i32 = arith.constant 0 : i32
    %c0_i32_0 = arith.constant 0 : i32
    return %arg0, %c0_i32 : i32, i32
  }
  func.func @transform_1(%arg0: i32) -> (i32, i32) {
    %c0_i32 = arith.constant 0 : i32
    %c0_i32_0 = arith.constant 0 : i32
    %c0_i32_1 = arith.constant 0 : i32
    return %c0_i32, %c0_i32_0 : i32, i32
  }
  func.func @transform_2(%arg0: i32) -> (i32, i32) {
    %c0_i32 = arith.constant 0 : i32
    %c0_i32_0 = arith.constant 0 : i32
    %c0_i32_1 = arith.constant 0 : i32
    return %c0_i32, %c0_i32_0 : i32, i32
  }
  func.func @transform_3(%arg0: i32) -> (i32, i32) {
    %c0_i32 = arith.constant 0 : i32
    %c0_i32_0 = arith.constant 0 : i32
    %c0_i32_1 = arith.constant 0 : i32
    return %c0_i32, %c0_i32_0 : i32, i32
  }
  func.func @transform_4(%arg0: i32) -> (i32, i32) {
    %c0_i32 = arith.constant 0 : i32
    %c0_i32_0 = arith.constant 0 : i32
    return %arg0, %c0_i32 : i32, i32
  }
}

</mosaic_0001>

<bundles_post_ra>
// kernel: tpu_custom_call.1
= control target key start
LH: loop header
LB: loop body
LE: loop exit
PB: predicated region body
PF: predicated region fallthrough
CT: control target
= control target key end

     0   :  { %vm98_vm0 = vcmask 261120   ;;  %s804_s0 = inlined_call_operand.vmem [shape: bf16[128,32], index: 0, kind: input, shape index: {}]   ;;  %s805_s1 = inlined_call_operand.vmem [shape: bf16[32,64], index: 1, kind: input, shape index: {}]   ;;  %s806_s2 = inlined_call_operand.vmem [shape: f32[1,64], index: 2, kind: input, shape index: {}]   ;;  %s807_s3 = inlined_call_operand.vmem [shape: bf16[64,128], index: 3, kind: input, shape index: {}]   ;;  %s808_s4 = inlined_call_operand.hbm [shape: f32[128,128], index: 4, kind: output, shape index: {}]  }
   0x1   :  { %v594_v0 = vld [vmem:[%s805_s1 + $0x8] sm:$0xff]   ;;  %v595_v1 = vld [vmem:[%s805_s1] sm:$0xff]   ;;  %v598_v4 = vld [vmem:[%s804_s0 + $0x10] sm:$0xff]  }
   0x2   :  { %547 = vmatprep.subr.bf16.mxu0 %v594_v0  ;;  %v596_v2 = vld [vmem:[%s804_s0] sm:$0xff]   ;;  %v597_v3 = vld [vmem:[%s804_s0 + $0x8] sm:$0xff]  }
   0x3   :  { %548 = vmatpush3.bf16.msra.mxu0 %v594_v0  ;;  %551 = vmatprep.mubr.msk.bf16.mxu0 %vm98_vm0, %v596_v2 }
   0x4   :  { %549 = vmatprep.subr.bf16.mxu0 %v595_v1 }
   0x7   :  { %550 = vmatpush3.bf16.msra.mxu0 %v595_v1 }
   0xa   :  { %552 = vmatmul.mubr.msk.bf16.vlgmr.msra.gmra.mxu0 %vm98_vm0, %v597_v3 }
   0xb   :  { %555 = vmatprep.mubr.msk.bf16.mxu0 %vm98_vm0, %v598_v4 }
   0xc   :  { %9 = vsyncpa [#allocation3], 0  ;;  %v599_v5 = vld [vmem:[%s804_s0 + $0x18] sm:$0xff]   ;;  %v600_v6 = vld [vmem:[%s804_s0 + $0x20] sm:$0xff]   ;;  %vm340_vm1 = vcmask 523264  }
   0xd   :  { %v601_v7 = vld [vmem:[%s804_s0 + $0x28] sm:$0xff]   ;;  %v602_v8 = vld [vmem:[%s804_s0 + $0x30] sm:$0xff]   ;;  %v603_v9 = vld [vmem:[%s804_s0 + $0x38] sm:$0xff]  }
   0xe   :  { %v604_v10 = vld [vmem:[%s807_s3 + $0x18] sm:$0xff]   ;;  %v605_v11 = vld [vmem:[%s807_s3 + $0x10] sm:$0xff]   ;;  %v606_v12 = vld [vmem:[%s807_s3 + $0x8] sm:$0xff]  }
   0xf   :  { %567 = vmatprep.subr.bf16.mxu1 %v604_v10  ;;  %v607_v13 = vld [vmem:[%s807_s3] sm:$0xff]  }
  0x10   :  { %568 = vmatpush3.bf16.msra.mxu1 %v604_v10  ;;  %v743_v14 = vld [vmem:[%s806_s2] ss:$0 sm:$0xff]  ;;  %s662_s2 = smov [#allocation2]  }
  0x11   :  { %569 = vmatprep.subr.bf16.mxu1 %v605_v11  ;;  %s483_s3 = sshll.u32 %s662_s2, 4  ;;  %s484_s3 = int_to_ptr.vmem [resolvable:$true] %s483_s3 }
  0x12   :  { %556 = vmatmul.mubr.msk.bf16.gmra.mxu0 %vm98_vm0, %v599_v5  ;;  %s640_s17 = scalar_lea.vmem %s484_s3, 2048  ;;  %p645_p1 = scmp.lt.s32.totalorder %s484_s3, %s484_s3 }
  0x13   :  { %559 = vmatprep.mubr.msk.bf16.mxu0 %vm98_vm0, %v600_v6  ;;  %p641_p0 = scmp.ne.s32.totalorder %s484_s3, %s640_s17  ;;  %p646_p2 = scmp.lt.s32.totalorder %s640_s17, %s640_s17 }
  0x14   :  { %570 = vmatpush3.bf16.msra.mxu1 %v605_v11 }
  0x15   :  { %571 = vmatprep.subr.bf16.mxu1 %v606_v12  ;;  %p647_p3 = por %p646_p2, %p645_p1 }
  0x17   :  { %p648_p4 = pnand %p647_p3, %p641_p0 }
  0x18   :  { %572 = vmatpush3.bf16.msra.mxu1 %v606_v12 }
  0x19   :  { %573 = vmatprep.subr.bf16.mxu1 %v607_v13 }
  0x1a   :  { %560 = vmatmul.mubr.msk.bf16.gmra.mxu0 %vm98_vm0, %v601_v7 }
  0x1b   :  { %563 = vmatprep.mubr.msk.bf16.mxu0 %vm98_vm0, %v602_v8 }
  0x1c   :  { %574 = vmatpush3.bf16.msra.mxu1 %v607_v13 }
  0x22   :  { %564 = vmatmul.mubr.msk.bf16.gmra.mxu0 %vm98_vm0, %v603_v9 }
  0xca   :  { %v553_v15 = vpop.f32.mrf.mxu0 }
  0xcb   :  { %v166_v16 = vadd.f32 %v553_v15, %v743_v14 }
  0xcc   :  { %v157_v17 = vpop.f32.mrf.mxu0 }
  0xcd   :  { %v238_v18 = vmul.f32 0.70710677, %v166_v16  ;;  %v158_v19 = vadd.f32 %v743_v14, %v157_v17  ;;  %v222_v59 = vmul.f32 0.5, %v166_v16 }
  0xce   :  { %v554_v20 = vpop.f32.mrf.mxu0 }
  0xcf   :  { %v236_v21 = vmul.f32 0.70710677, %v158_v19  ;;  %v169_v22 = vadd.f32 %v554_v20, %v743_v14  ;;  %608 = verf.f32 %v238_v18  ;;  %v220_v60 = vmul.f32 0.5, %v158_v19 }
  0xd0   :  { %v160_v23 = vpop.f32.mrf.mxu0 }
  0xd1   :  { %v239_v24 = vmul.f32 0.70710677, %v169_v22  ;;  %v161_v25 = vadd.f32 %v743_v14, %v160_v23  ;;  %610 = verf.f32 %v236_v21  ;;  %v223_v56 = vmul.f32 0.5, %v169_v22 }
  0xd2   :  { %v557_v26 = vpop.f32.mrf.mxu0 }
  0xd3   :  { %612 = verf.f32 %v239_v24  ;;  %v237_v27 = vmul.f32 0.70710677, %v161_v25  ;;  %v750_v28 = vadd.f32 %v557_v26, %v743_v14  ;;  %v221_v63 = vmul.f32 0.5, %v161_v25 }
  0xd4   :  { %v173_v29 = vpop.f32.mrf.mxu0 }
  0xd5   :  { %614 = verf.f32 %v237_v27  ;;  %v753_v30 = vadd.f32 %v743_v14, %v173_v29  ;;  %v242_v31 = vmul.f32 0.70710677, %v750_v28 }
  0xd6   :  { %v558_v32 = vpop.f32.mrf.mxu0 }
  0xd7   :  { %v240_v33 = vmul.f32 0.70710677, %v753_v30  ;;  %v185_v34 = vadd.f32 %v558_v32, %v743_v14  ;;  %v224_v22 = vmul.f32 0.5, %v753_v30 }
  0xd8   :  { %v176_v35 = vpop.f32.mrf.mxu0 }
  0xd9   :  { %616 = verf.f32 %v240_v33  ;;  %v243_v36 = vmul.f32 0.70710677, %v185_v34  ;;  %v177_v37 = vadd.f32 %v743_v14, %v176_v35  ;;  %v227_v23 = vmul.f32 0.5, %v185_v34 }
  0xda   :  { %618 = verf.f32 %v242_v31  ;;  %v561_v38 = vpop.f32.mrf.mxu0  ;;  %v226_v31 = vmul.f32 0.5, %v750_v28 }
  0xdb   :  { %620 = verf.f32 %v243_v36  ;;  %v241_v39 = vmul.f32 0.70710677, %v177_v37  ;;  %v760_v40 = vadd.f32 %v561_v38, %v743_v14  ;;  %v225_v24 = vmul.f32 0.5, %v177_v37 }
  0xdc   :  { %v189_v41 = vpop.f32.mrf.mxu0  ;;  %v609_v43 = vpop.eup %608 }
  0xdd   :  { %622 = verf.f32 %v241_v39  ;;  %v246_v42 = vmul.f32 0.70710677, %v760_v40  ;;  %v764_v44 = vadd.f32 %v743_v14, %v189_v41  ;;  %v270_v55 = vadd.f32 1.0, %v609_v43 }
  0xde   :  { %v562_v45 = vpop.f32.mrf.mxu0  ;;  %v611_v46 = vpop.eup %610 }
  0xdf   :  { %v767_v47 = vadd.f32 %v562_v45, %v743_v14  ;;  %v244_v49 = vmul.f32 0.70710677, %v764_v44  ;;  %624 = verf.f32 %v246_v42  ;;  %v268_v58 = vadd.f32 1.0, %v611_v46 }
  0xe0   :  { %v613_v48 = vpop.eup %612  ;;  %v192_v50 = vpop.f32.mrf.mxu0  ;;  %v286_v5 = vmul.f32 %v270_v55, %v222_v59  ;;  %v228_v43 = vmul.f32 0.5, %v764_v44 }
  0xe1   :  { %v271_v51 = vadd.f32 1.0, %v613_v48  ;;  %v247_v52 = vmul.f32 0.70710677, %v767_v47  ;;  %v772_v53 = vadd.f32 %v743_v14, %v192_v50  ;;  %626 = verf.f32 %v244_v49 }
  0xe2   :  { %v615_v54 = vpop.eup %614  ;;  %v565_v57 = vpop.f32.mrf.mxu0  ;;  %v284_v7 = vmul.f32 %v268_v58, %v220_v60  ;;  %v231_v28 = vmul.f32 0.5, %v767_v47  ;;  %v230_v49 = vmul.f32 0.5, %v760_v40 }
  0xe3   :  { %628 = verf.f32 %v247_v52  ;;  %v245_v61 = vmul.f32 0.70710677, %v772_v53  ;;  %v287_v62 = vmul.f32 %v271_v51, %v223_v56  ;;  %v776_v0 = vadd.f32 %v565_v57, %v743_v14 }
  0xe4   :  { %v205_v1 = vpop.f32.mrf.mxu0  ;;  %v269_v2 = vadd.f32 1.0, %v615_v54  ;;  %v229_v46 = vmul.f32 0.5, %v772_v53 }
  0xe5   :  { %630 = verf.f32 %v245_v61  ;;  %v779_v3 = vadd.f32 %v743_v14, %v205_v1  ;;  %v250_v10 = vmul.f32 0.70710677, %v776_v0  ;;  %v301_v13 = vpack.c.bf16 %v287_v62, %v286_v5 }
  0xe6   :  { %v617_v4 = vpop.eup %616  ;;  %v566_v6 = vpop.f32.mrf.mxu0  ;;  %v285_v8 = vmul.f32 %v269_v2, %v221_v63  ;;  %v234_v1 = vmul.f32 0.5, %v776_v0 }
  0xe7   :  { %v619_v9 = vpop.eup %618  ;;  %v248_v11 = vmul.f32 0.70710677, %v779_v3  ;;  %v217_v15 = vadd.f32 %v566_v6, %v743_v14  ;;  %v272_v18 = vadd.f32 1.0, %v617_v4  ;;  %v232_v53 = vmul.f32 0.5, %v779_v3 }
  0xe8   :  { %v621_v12 = vpop.eup %620  ;;  %v208_v16 = vpop.f32.mrf.mxu0  ;;  %v300_v17 = vpack.c.bf16 %v285_v8, %v284_v7  ;;  %v274_v26 = vadd.f32 1.0, %v619_v9 }
  0xe9   :  { %v275_v19 = vadd.f32 1.0, %v621_v12  ;;  %632 = verf.f32 %v248_v11  ;;  %v209_v20 = vadd.f32 %v743_v14, %v208_v16  ;;  %v251_v25 = vmul.f32 0.70710677, %v217_v15 }
  0xea   :  { %v623_v21 = vpop.eup %622  ;;  %575 = vmatprep.mubr.msk.bf16.mxu1 %vm340_vm1, %v300_v17  ;;  %634 = verf.f32 %v250_v10  ;;  %v288_v32 = vmul.f32 %v272_v18, %v224_v22  ;;  %v290_v34 = vmul.f32 %v274_v26, %v226_v31  ;;  %v235_v62 = vmul.f32 0.5, %v217_v15 }
  0xeb   :  { %v273_v27 = vadd.f32 1.0, %v623_v21  ;;  %v249_v29 = vmul.f32 0.70710677, %v209_v20  ;;  %576 = vmatmul.mubr.msk.bf16.vlgmr.msra.gmra.mxu1 %vm340_vm1, %v301_v13  ;;  %636 = verf.f32 %v251_v25  ;;  %v291_v33 = vmul.f32 %v275_v19, %v227_v23 }
  0xec   :  { %v625_v35 = vpop.eup %624  ;;  %v233_v63 = vmul.f32 0.5, %v209_v20 }
  0xed   :  { %v289_v14 = vmul.f32 %v273_v27, %v225_v24  ;;  %638 = verf.f32 %v249_v29  ;;  %v303_v38 = vpack.c.bf16 %v291_v33, %v290_v34  ;;  %v278_v45 = vadd.f32 1.0, %v625_v35 }
  0xee   :  { %v627_v30 = vpop.eup %626 }
  0xef   :  { %v302_v36 = vpack.c.bf16 %v289_v14, %v288_v32  ;;  %v276_v39 = vadd.f32 1.0, %v627_v30  ;;  %v294_v55 = vmul.f32 %v278_v45, %v230_v49 }
  0xf0   :  { %v629_v37 = vpop.eup %628 }
  0xf1   :  { %v279_v41 = vadd.f32 1.0, %v629_v37  ;;  %579 = vmatprep.mubr.msk.bf16.mxu1 %vm340_vm1, %v302_v36  ;;  %v292_v50 = vmul.f32 %v276_v39, %v228_v43 }
  0xf2   :  { %v631_v42 = vpop.eup %630 }
  0xf3   :  { %v277_v48 = vadd.f32 1.0, %v631_v42  ;;  %580 = vmatmul.mubr.msk.bf16.gmra.mxu1 %vm340_vm1, %v303_v38  ;;  %v295_v51 = vmul.f32 %v279_v41, %v231_v28 }
  0xf5   :  { %v293_v52 = vmul.f32 %v277_v48, %v229_v46  ;;  %v305_v59 = vpack.c.bf16 %v295_v51, %v294_v55 }
  0xf6   :  { %v633_v54 = vpop.eup %632 }
  0xf7   :  { %v304_v56 = vpack.c.bf16 %v293_v52, %v292_v50  ;;  %v635_v57 = vpop.eup %634  ;;  %v280_v44 = vadd.f32 1.0, %v633_v54 }
  0xf8   :  { %v637_v58 = vpop.eup %636  ;;  %v282_v61 = vadd.f32 1.0, %v635_v57 }
  0xf9   :  { %583 = vmatprep.mubr.msk.bf16.mxu1 %vm340_vm1, %v304_v56  ;;  %v283_v60 = vadd.f32 1.0, %v637_v58  ;;  %v296_v2 = vmul.f32 %v280_v44, %v232_v53 }
  0xfa   :  { %v639_v47 = vpop.eup %638  ;;  %v298_v6 = vmul.f32 %v282_v61, %v234_v1 }
  0xfb   :  { %v281_v40 = vadd.f32 1.0, %v639_v47  ;;  %584 = vmatmul.mubr.msk.bf16.gmra.mxu1 %vm340_vm1, %v305_v59  ;;  %v299_v4 = vmul.f32 %v283_v60, %v235_v62 }
  0xfd   :  { %v297_v5 = vmul.f32 %v281_v40, %v233_v63  ;;  %v307_v8 = vpack.c.bf16 %v299_v4, %v298_v6 }
  0xff   :  { %v306_v7 = vpack.c.bf16 %v297_v5, %v296_v2 }
 0x101   :  { %587 = vmatprep.mubr.msk.bf16.mxu1 %vm340_vm1, %v306_v7 }
 0x103   :  { %588 = vmatmul.mubr.msk.bf16.gmra.mxu1 %vm340_vm1, %v307_v8 }
 0x1ab   :  { %v577_v3 = vpop.f32.mrf.mxu1 }
 0x1ac   :  { %464 = vst [vmem:[#allocation2 + $0x10] sm:$0xff] %v577_v3 }
 0x1ad   :  { %v399_v9 = vpop.f32.mrf.mxu1 }
 0x1ae   :  { %462 = vst [vmem:[#allocation2] sm:$0xff] %v399_v9 }
 0x1af   :  { %v578_v10 = vpop.f32.mrf.mxu1 }
 0x1b0   :  { %465 = vst [vmem:[#allocation2 + $0x18] sm:$0xff] %v578_v10 }
 0x1b1   :  { %v402_v11 = vpop.f32.mrf.mxu1 }
 0x1b2   :  { %463 = vst [vmem:[#allocation2 + $0x8] sm:$0xff] %v402_v11 }
 0x1b3   :  { %v581_v12 = vpop.f32.mrf.mxu1 }
 0x1b4   :  { %468 = vst [vmem:[#allocation2 + $0x30] sm:$0xff] %v581_v12 }
 0x1b5   :  { %v415_v0 = vpop.f32.mrf.mxu1 }
 0x1b6   :  { %466 = vst [vmem:[#allocation2 + $0x20] sm:$0xff] %v415_v0 }
 0x1b7   :  { %v582_v13 = vpop.f32.mrf.mxu1 }
 0x1b8   :  { %469 = vst [vmem:[#allocation2 + $0x38] sm:$0xff] %v582_v13 }
 0x1b9   :  { %v418_v15 = vpop.f32.mrf.mxu1 }
 0x1ba   :  { %467 = vst [vmem:[#allocation2 + $0x28] sm:$0xff] %v418_v15 }
 0x1bb   :  { %v585_v16 = vpop.f32.mrf.mxu1 }
 0x1bc   :  { %472 = vst [vmem:[#allocation2 + $0x50] sm:$0xff] %v585_v16 }
 0x1bd   :  { %v431_v17 = vpop.f32.mrf.mxu1 }
 0x1be   :  { %470 = vst [vmem:[#allocation2 + $0x40] sm:$0xff] %v431_v17 }
 0x1bf   :  { %v586_v18 = vpop.f32.mrf.mxu1 }
 0x1c0   :  { %473 = vst [vmem:[#allocation2 + $0x58] sm:$0xff] %v586_v18 }
 0x1c1   :  { %v434_v19 = vpop.f32.mrf.mxu1 }
 0x1c2   :  { %471 = vst [vmem:[#allocation2 + $0x48] sm:$0xff] %v434_v19 }
 0x1c3   :  { %v589_v20 = vpop.f32.mrf.mxu1 }
 0x1c4   :  { %476 = vst [vmem:[#allocation2 + $0x70] sm:$0xff] %v589_v20 }
 0x1c5   :  { %v447_v21 = vpop.f32.mrf.mxu1 }
 0x1c6   :  { %474 = vst [vmem:[#allocation2 + $0x60] sm:$0xff] %v447_v21 }
 0x1c7   :  { %v590_v22 = vpop.f32.mrf.mxu1 }
 0x1c8   :  { %477 = vst [vmem:[#allocation2 + $0x78] sm:$0xff] %v590_v22 }
 0x1c9   :  { %v450_v23 = vpop.f32.mrf.mxu1 }
 0x1ca   :  { %475 = vst [vmem:[#allocation2 + $0x68] sm:$0xff] %v450_v23 }
 0x1cb   :  { %651 = shalt.err (!%p648_p4)
}
 0x1cc   :  { %s663_s18 = smov 128   ;;  %s664_s19 = smov 8  }
 0x1cd   :  { %489 = dma.vmem_to_hbm [thread:$0]  %s484_s3, 2048, %s808_s4, [#allocation3], %s663_s18, %s663_s18, %s664_s19  }
 0x1ce   :  { %660 = dma.done.wait [#allocation3], 2048  }
 0x1cf   :  { %661 = vsyncadd [#allocation3], 4294965248 }
 0x1d0   :  { %493 = vsyncpa [#allocation3], 1 }

</bundles_post_ra>
